<compile_context>
chip_gen: v7x
topology: tpu7x:2x2x1
jax: 0.10.0
libtpu: 0.0.40
codegen_flags: <defaults>
</compile_context>

<pallas_src>
import functools
import math

import jax
import jax.numpy as jnp
from jax import lax
from jax.experimental import pallas as pl
from jax.experimental.pallas import tpu as pltpu

LN_EPS = 1e-5
MAX_ROW_TILE = 512        # row tile for init_embed / FFN kernels (mem-bound)
MAX_Q_TILE = 512          # query-row tile for the attention kernel


@functools.lru_cache(maxsize=None)
def _vmem_limit_bytes():
    # ~3/4 of physical VMEM, capped at 96 MiB: v5e/v6e -> 96 MiB, v7x -> 48 MiB.
    try:
        cap = int(pltpu.get_tpu_info().vmem_capacity_bytes)
    except Exception:
        cap = 64 * 1024 * 1024            # conservative (v7x-sized) fallback
    return min(96 * 1024 * 1024, (cap * 3) // 4)


def _compiler_params(semantics):
    return pltpu.CompilerParams(dimension_semantics=semantics,
                                vmem_limit_bytes=_vmem_limit_bytes())


def _tile(n, max_tile):
    """Largest tile <= max_tile dividing n, preferring MXU-width alignment."""
    if n <= max_tile:
        return n
    for align in (256, 128, 8):
        t = (max_tile // align) * align
        while t >= align:
            if n % t == 0:
                return t
            t -= align
    # TODO(synk): ragged n falls back to one whole-slab block (no masked
    # partial-tile path); may exceed the VMEM budget for very large ragged n.
    return n


def _invariant_spec(arr, grid_rank):
    """Grid-invariant operand: fetched once, single-buffered in VMEM."""
    zeros = (0,) * arr.ndim
    imap = (lambda i: zeros) if grid_rank == 1 else (lambda b, q: zeros)
    return pl.BlockSpec(arr.shape, imap, pipeline_mode=pl.Buffered(1))


# ---------------------------------------------------------------------------
# Kernels
# ---------------------------------------------------------------------------
def _linear_kernel(x_ref, w_ref, b_ref, o_ref):
    # y = x @ W + b  (bf16 MXU inputs, f32 accumulation, bf16 activations out)
    o_ref[...] = (
        jnp.dot(x_ref[...].astype(jnp.bfloat16), w_ref[...],
                preferred_element_type=jnp.float32) + b_ref[...]
    ).astype(o_ref.dtype)


def _attn_block_kernel(*refs, nb_heads, head_dim, eps, split_query):
    # Fused: Q / KV projections -> per-head softmax attention -> output
    # projection -> residual add -> LayerNorm.  One (batch, query-tile) block
    # per grid step.
    if split_query:
        (hq_ref, hkv_ref, wq_ref, wkv_ref, wo_ref,
         g_ref, be_ref, o_ref, ctx_ref) = refs
    else:
        (hkv_ref, wq_ref, wkv_ref, wo_ref,
         g_ref, be_ref, o_ref, ctx_ref) = refs
        hq_ref = hkv_ref

    K, D = nb_heads, head_dim
    H = K * D
    scale = 1.0 / math.sqrt(D)

    hq = hq_ref[0]                       # (tq, H) bf16 activations
    hkv = hkv_ref[0]                     # (M,  H) bf16 activations
    hq_f32 = hq.astype(jnp.float32)      # residual / LN statistics stay f32

    # Fused projections (bf16 MXU inputs, f32 accumulation).
    # 1/sqrt(D) folded into Q: tq*H multiplies instead of K*tq*M on the scores.
    q_all = jnp.dot(hq, wq_ref[...],
                    preferred_element_type=jnp.float32) * scale        # (tq, H)
    kv_all = jnp.dot(hkv, wkv_ref[...],
                     preferred_element_type=jnp.float32
                     ).astype(jnp.bfloat16)                            # (M, 2H)

    # Per-head attention; contexts go into a VMEM scratch slab so the live set
    # stays bounded to one head and no lane-relayout concatenate is needed.
    for kk in range(K):
        sl = slice(kk * D, (kk + 1) * D)
        qh = q_all[:, sl].astype(jnp.bfloat16)                         # (tq, D)
        kh = kv_all[:, sl]                                             # (M,  D)
        vh = kv_all[:, H + kk * D:H + (kk + 1) * D]                    # (M,  D)
        # Contract over D with K untransposed (no explicit XLU transpose).
        s = lax.dot_general(qh, kh, (((1,), (1,)), ((), ())),
                            preferred_element_type=jnp.float32)        # (tq, M)
        s = s - jnp.max(s, axis=-1, keepdims=True)
        p = jnp.exp(s)
        # approx reciprocal runs on the EUP slot (~1e-3 rel. vs exact divide).
        p = p * pl.reciprocal(jnp.sum(p, axis=-1, keepdims=True), approx=True)
        ctx_ref[:, sl] = jnp.dot(
            p.astype(jnp.bfloat16), vh,
            preferred_element_type=jnp.float32).astype(jnp.bfloat16)

    attn_out = jnp.dot(ctx_ref[...], wo_ref[...],
                       preferred_element_type=jnp.float32)             # (tq, H)

    # residual + LayerNorm (f32)
    x = hq_f32 + attn_out
    mean = jnp.mean(x, axis=-1, keepdims=True)
    var = jnp.mean(jnp.square(x - mean), axis=-1, keepdims=True)
    y = (x - mean) * lax.rsqrt(var + eps) * g_ref[...] + be_ref[...]
    o_ref[0] = y.astype(o_ref.dtype)


def _ffn_ln_kernel(h_ref, w1_ref, b1_ref, w2_ref, b2_ref, g_ref, be_ref, o_ref,
                   *, eps):
    # Fused: fc1 + ReLU + fc2 + residual add + LayerNorm.  Row tile per step.
    h = h_ref[...]                                     # (tm, H) bf16
    h_f32 = h.astype(jnp.float32)
    h1 = jnp.dot(h, w1_ref[...], preferred_element_type=jnp.float32) + b1_ref[...]
    h1 = jnp.maximum(h1, 0.0)
    ff = jnp.dot(h1.astype(jnp.bfloat16), w2_ref[...],
                 preferred_element_type=jnp.float32) + b2_ref[...]
    x = h_f32 + ff
    mean = jnp.mean(x, axis=-1, keepdims=True)
    var = jnp.mean(jnp.square(x - mean), axis=-1, keepdims=True)
    o_ref[...] = ((x - mean) * lax.rsqrt(var + eps) * g_ref[...]
                  + be_ref[...]).astype(o_ref.dtype)


# ---------------------------------------------------------------------------
# pallas_call wrappers
# ---------------------------------------------------------------------------
def pallas_row_linear(x2d, w, b):
    n, s = x2d.shape
    dout = w.shape[1]
    tm = _tile(n, MAX_ROW_TILE)
    return pl.pallas_call(
        _linear_kernel,
        grid=(n // tm,),
        in_specs=[
            pl.BlockSpec((tm, s), lambda i: (i, 0)),
            _invariant_spec(w, 1),
            _invariant_spec(b, 1),
        ],
        out_specs=pl.BlockSpec((tm, dout), lambda i: (i, 0)),
        out_shape=jax.ShapeDtypeStruct((n, dout), jnp.bfloat16),
        compiler_params=_compiler_params(("parallel",)),
    )(x2d, w, b)


def pallas_attn_block(h, wq, wkv, wo, gamma, beta, nb_heads, eps=LN_EPS):
    B, M, H = h.shape
    tq = _tile(M, MAX_Q_TILE)
    n_qt = M // tq
    split_query = n_qt > 1

    kernel = functools.partial(
        _attn_block_kernel, nb_heads=nb_heads, head_dim=H // nb_heads,
        eps=eps, split_query=split_query)

    kv_spec = pl.BlockSpec((1, M, H), lambda b, q: (b, 0, 0))
    q_spec = pl.BlockSpec((1, tq, H), lambda b, q: (b, q, 0))
    weight_specs = [_invariant_spec(a, 2) for a in (wq, wkv, wo, gamma, beta)]

    if split_query:
        in_specs = [q_spec, kv_spec] + weight_specs
        args = (h, h, wq, wkv, wo, gamma, beta)
    else:
        in_specs = [kv_spec] + weight_specs
        args = (h, wq, wkv, wo, gamma, beta)

    return pl.pallas_call(
        kernel,
        grid=(B, n_qt),
        in_specs=in_specs,
        out_specs=pl.BlockSpec((1, tq, H), lambda b, q: (b, q, 0)),
        out_shape=jax.ShapeDtypeStruct((B, M, H), jnp.bfloat16),
        scratch_shapes=[pltpu.VMEM((tq, H), jnp.bfloat16)],
        compiler_params=_compiler_params(("parallel", "parallel")),
    )(*args)


def pallas_ffn_block(h2d, w1, b1, w2, b2, gamma, beta, eps=LN_EPS):
    n, hdim = h2d.shape
    tm = _tile(n, MAX_ROW_TILE)
    kernel = functools.partial(_ffn_ln_kernel, eps=eps)
    return pl.pallas_call(
        kernel,
        grid=(n // tm,),
        in_specs=[
            pl.BlockSpec((tm, hdim), lambda i: (i, 0)),
            _invariant_spec(w1, 1), _invariant_spec(b1, 1),
            _invariant_spec(w2, 1), _invariant_spec(b2, 1),
            _invariant_spec(gamma, 1), _invariant_spec(beta, 1),
        ],
        out_specs=pl.BlockSpec((tm, hdim), lambda i: (i, 0)),
        out_shape=jax.ShapeDtypeStruct((n, hdim), jnp.bfloat16),
        compiler_params=_compiler_params(("parallel",)),
    )(h2d, w1, b1, w2, b2, gamma, beta)


# ---------------------------------------------------------------------------
# Parameters (deterministic, in-script)
# ---------------------------------------------------------------------------
def _dense_init(key, din, dout, bias=True):
    k1, k2 = jax.random.split(key)
    bound = 1.0 / math.sqrt(din)
    w = jax.random.uniform(k1, (din, dout), jnp.float32, -bound, bound)
    b = (jax.random.uniform(k2, (1, dout), jnp.float32, -bound, bound)
         if bias else None)
    return w, b


def init_params(key, state_size, hidden_size, inner_hidden_size, nb_layers):
    keys = jax.random.split(key, 1 + nb_layers)
    params = {}
    w, b = _dense_init(keys[0], state_size, hidden_size)
    params["init_w"] = w.astype(jnp.bfloat16)           # bf16 weights in HBM
    params["init_b"] = b

    layers = []
    for li in range(nb_layers):
        lk = jax.random.split(keys[1 + li], 10)
        wq, _ = _dense_init(lk[0], hidden_size, hidden_size, bias=False)
        wk, _ = _dense_init(lk[1], hidden_size, hidden_size, bias=False)
        wv, _ = _dense_init(lk[2], hidden_size, hidden_size, bias=False)
        wo, _ = _dense_init(lk[3], hidden_size, hidden_size, bias=False)
        w1, b1 = _dense_init(lk[4], hidden_size, inner_hidden_size)
        w2, b2 = _dense_init(lk[5], inner_hidden_size, hidden_size)
        stdv = 1.0 / math.sqrt(hidden_size)
        g1 = jax.random.uniform(lk[6], (1, hidden_size), jnp.float32, -stdv, stdv)
        be1 = jax.random.uniform(lk[7], (1, hidden_size), jnp.float32, -stdv, stdv)
        g2 = jax.random.uniform(lk[8], (1, hidden_size), jnp.float32, -stdv, stdv)
        be2 = jax.random.uniform(lk[9], (1, hidden_size), jnp.float32, -stdv, stdv)
        layers.append(dict(
            wq=wq.astype(jnp.bfloat16),
            # fused KV weight: [H, 2H] = [Wk | Wv]
            wkv=jnp.concatenate([wk, wv], axis=1).astype(jnp.bfloat16),
            wo=wo.astype(jnp.bfloat16),
            w1=w1.astype(jnp.bfloat16), b1=b1,
            w2=w2.astype(jnp.bfloat16), b2=b2,
            g1=g1, be1=be1, g2=g2, be2=be2,
        ))
    params["layers"] = layers
    return params


# ---------------------------------------------------------------------------
# EncoderSeq forward
# ---------------------------------------------------------------------------
def encoder_seq_forward(params, x, nb_heads):
    B, M, S = x.shape
    x = x.astype(jnp.float32)                # matches x.float() in the module
    H = params["init_w"].shape[1]

    # init_embed (row-tiled linear; bf16 activations out).
    # TODO(synk): could be fused into the first attention kernel entirely.
    h = pallas_row_linear(x.reshape(B * M, S), params["init_w"], params["init_b"])
    h = h.reshape(B, M, H)

    for lp in params["layers"]:
        # attention sub-layer: Q/KV proj + per-head attention + proj + res + LN
        h = pallas_attn_block(h, lp["wq"], lp["wkv"], lp["wo"],
                              lp["g1"], lp["be1"], nb_heads)
        # feed-forward sub-layer: fc1 + ReLU + fc2 + residual + LN
        h = pallas_ffn_block(h.reshape(B * M, H), lp["w1"], lp["b1"],
                             lp["w2"], lp["b2"], lp["g2"], lp["be2"]
                             ).reshape(B, M, H)
    return h.astype(jnp.float32)


# ---------------------------------------------------------------------------
if __name__ == "__main__":
    key = jax.random.PRNGKey(0)
    kx, kp = jax.random.split(key)

    B, M, STATE = 2, 8, 4          # batch, sequence length, state_size
    HIDDEN, HEADS, LAYERS = 32, 4, 2
    INNER = 64                     # inner_hidden_size of the FFN
    # NOTE: for benchmarking, use HIDDEN / INNER that are multiples of 128 so
    # every block's last dim is lane-dense; the demo stays small by design.

    x = jax.random.normal(kx, (B, M, STATE), jnp.float32)
    params = init_params(kp, STATE, HIDDEN, INNER, LAYERS)

    fwd = jax.jit(functools.partial(encoder_seq_forward, nb_heads=HEADS))
    out = fwd(params, x)
    jax.block_until_ready(out)

    assert out.shape == (B, M, HIDDEN)
    assert bool(jnp.all(jnp.isfinite(out)))
    print("KERNEL_OK")
</pallas_src>

<mosaic_0001>
module attributes {stable_mosaic.version = 11 : i64} {
  func.func @_linear_kernel(%arg0: i32, %arg1: memref<16x4xf32, #tpu.memory_space<vmem>>, %arg2: memref<4x32xbf16, #tpu.memory_space<vmem>>, %arg3: memref<1x32xf32, #tpu.memory_space<vmem>>, %arg4: memref<16x32xbf16, #tpu.memory_space<vmem>>) attributes {dimension_semantics = [#tpu.dimension_semantics<parallel>], iteration_bounds = array<i64: 1>, scalar_prefetch = 0 : i64, scratch_operands = 0 : i64, tpu.core_type = #tpu.core_type<tc>, window_params = [{transform_indices = @transform_0, window_bounds = array<i64: 16, 4>}, {pipeline_mode = #tpu.pipeline_mode<synchronous>, transform_indices = @transform_1, window_bounds = array<i64: 4, 32>}, {pipeline_mode = #tpu.pipeline_mode<synchronous>, transform_indices = @transform_2, window_bounds = array<i64: 1, 32>}, {transform_indices = @transform_3, window_bounds = array<i64: 16, 32>}]} {
    %c0 = arith.constant 0 : index
    %c0_0 = arith.constant 0 : index
    %0 = vector.load %arg1[%c0, %c0_0] : memref<16x4xf32, #tpu.memory_space<vmem>>, vector<16x4xf32>
    %1 = arith.truncf %0 : vector<16x4xf32> to vector<16x4xbf16>
    %c0_1 = arith.constant 0 : index
    %c0_2 = arith.constant 0 : index
    %2 = vector.load %arg2[%c0_1, %c0_2] : memref<4x32xbf16, #tpu.memory_space<vmem>>, vector<4x32xbf16>
    %cst = arith.constant dense<0.000000e+00> : vector<16x32xf32>
    %3 = tpu.matmul %1, %2, %cst {dimension_numbers = #tpu.dot_dimension_numbers<[1], [0], [0], [1], [0, 0, 1, 1], [], []>} : vector<16x4xbf16>, vector<4x32xbf16>, vector<16x32xf32> -> vector<16x32xf32>
    %c0_3 = arith.constant 0 : index
    %c0_4 = arith.constant 0 : index
    %4 = vector.load %arg3[%c0_3, %c0_4] : memref<1x32xf32, #tpu.memory_space<vmem>>, vector<1x32xf32>
    %5 = vector.broadcast %4 : vector<1x32xf32> to vector<16x32xf32>
    %6 = arith.addf %3, %5 : vector<16x32xf32>
    %7 = arith.truncf %6 : vector<16x32xf32> to vector<16x32xbf16>
    %c0_5 = arith.constant 0 : index
    %c0_6 = arith.constant 0 : index
    %8 = vector.load %arg4[%c0_5, %c0_6] : memref<16x32xbf16, #tpu.memory_space<vmem>>, vector<16x32xbf16>
    tpu.vector_store %arg4[%c0_5, %c0_6], %7 {strides = array<i32>} : memref<16x32xbf16, #tpu.memory_space<vmem>>, vector<16x32xbf16>,
    return
  }
  func.func @transform_0(%arg0: i32) -> (i32, i32) {
    %c0_i32 = arith.constant 0 : i32
    %c0_i32_0 = arith.constant 0 : i32
    return %arg0, %c0_i32 : i32, i32
  }
  func.func @transform_1(%arg0: i32) -> (i32, i32) {
    %c0_i32 = arith.constant 0 : i32
    %c0_i32_0 = arith.constant 0 : i32
    %c0_i32_1 = arith.constant 0 : i32
    return %c0_i32, %c0_i32_0 : i32, i32
  }
  func.func @transform_2(%arg0: i32) -> (i32, i32) {
    %c0_i32 = arith.constant 0 : i32
    %c0_i32_0 = arith.constant 0 : i32
    %c0_i32_1 = arith.constant 0 : i32
    return %c0_i32, %c0_i32_0 : i32, i32
  }
  func.func @transform_3(%arg0: i32) -> (i32, i32) {
    %c0_i32 = arith.constant 0 : i32
    %c0_i32_0 = arith.constant 0 : i32
    return %arg0, %c0_i32 : i32, i32
  }
}

module attributes {stable_mosaic.version = 11 : i64} {
  func.func @_attn_block_kernel(%arg0: i32, %arg1: i32, %arg2: memref<1x8x32xbf16, #tpu.memory_space<vmem>>, %arg3: memref<32x32xbf16, #tpu.memory_space<vmem>>, %arg4: memref<32x64xbf16, #tpu.memory_space<vmem>>, %arg5: memref<32x32xbf16, #tpu.memory_space<vmem>>, %arg6: memref<1x32xf32, #tpu.memory_space<vmem>>, %arg7: memref<1x32xf32, #tpu.memory_space<vmem>>, %arg8: memref<1x8x32xbf16, #tpu.memory_space<vmem>>, %arg9: memref<8x32xbf16, #tpu.memory_space<vmem>>) attributes {dimension_semantics = [#tpu.dimension_semantics<parallel>, #tpu.dimension_semantics<parallel>], iteration_bounds = array<i64: 2, 1>, scalar_prefetch = 0 : i64, scratch_operands = 1 : i64, tpu.core_type = #tpu.core_type<tc>, window_params = [{transform_indices = @transform_0, window_bounds = array<i64: 1, 8, 32>}, {pipeline_mode = #tpu.pipeline_mode<synchronous>, transform_indices = @transform_1, window_bounds = array<i64: 32, 32>}, {pipeline_mode = #tpu.pipeline_mode<synchronous>, transform_indices = @transform_2, window_bounds = array<i64: 32, 64>}, {pipeline_mode = #tpu.pipeline_mode<synchronous>, transform_indices = @transform_3, window_bounds = array<i64: 32, 32>}, {pipeline_mode = #tpu.pipeline_mode<synchronous>, transform_indices = @transform_4, window_bounds = array<i64: 1, 32>}, {pipeline_mode = #tpu.pipeline_mode<synchronous>, transform_indices = @transform_5, window_bounds = array<i64: 1, 32>}, {transform_indices = @transform_6, window_bounds = array<i64: 1, 8, 32>}]} {
    %c0 = arith.constant 0 : index
    %c0_0 = arith.constant 0 : index
    %c0_1 = arith.constant 0 : index
    %0 = vector.load %arg2[%c0, %c0_0, %c0_1] : memref<1x8x32xbf16, #tpu.memory_space<vmem>>, vector<1x8x32xbf16>
    %1 = vector.shape_cast %0 : vector<1x8x32xbf16> to vector<8x32xbf16>
    %c0_2 = arith.constant 0 : index
    %c0_3 = arith.constant 0 : index
    %c0_4 = arith.constant 0 : index
    %2 = vector.load %arg2[%c0_2, %c0_3, %c0_4] : memref<1x8x32xbf16, #tpu.memory_space<vmem>>, vector<1x8x32xbf16>
    %3 = vector.shape_cast %2 : vector<1x8x32xbf16> to vector<8x32xbf16>
    %4 = arith.extf %1 : vector<8x32xbf16> to vector<8x32xf32>
    %c0_5 = arith.constant 0 : index
    %c0_6 = arith.constant 0 : index
    %5 = vector.load %arg3[%c0_5, %c0_6] : memref<32x32xbf16, #tpu.memory_space<vmem>>, vector<32x32xbf16>
    %cst = arith.constant dense<0.000000e+00> : vector<8x32xf32>
    %6 = tpu.matmul %1, %5, %cst {dimension_numbers = #tpu.dot_dimension_numbers<[1], [0], [0], [1], [0, 0, 1, 1], [], []>} : vector<8x32xbf16>, vector<32x32xbf16>, vector<8x32xf32> -> vector<8x32xf32>
    %cst_7 = arith.constant 0.353553385 : f32
    %7 = vector.broadcast %cst_7 : f32 to vector<8x32xf32>
    %8 = arith.mulf %6, %7 : vector<8x32xf32>
    %c0_8 = arith.constant 0 : index
    %c0_9 = arith.constant 0 : index
    %9 = vector.load %arg4[%c0_8, %c0_9] : memref<32x64xbf16, #tpu.memory_space<vmem>>, vector<32x64xbf16>
    %cst_10 = arith.constant dense<0.000000e+00> : vector<8x64xf32>
    %10 = tpu.matmul %3, %9, %cst_10 {dimension_numbers = #tpu.dot_dimension_numbers<[1], [0], [0], [1], [0, 0, 1, 1], [], []>} : vector<8x32xbf16>, vector<32x64xbf16>, vector<8x64xf32> -> vector<8x64xf32>
    %11 = arith.truncf %10 : vector<8x64xf32> to vector<8x64xbf16>
    %12 = vector.extract_strided_slice %8 {offsets = [0, 0], sizes = [8, 8], strides = [1, 1]} : vector<8x32xf32> to vector<8x8xf32>
    %13 = arith.truncf %12 : vector<8x8xf32> to vector<8x8xbf16>
    %14 = vector.extract_strided_slice %11 {offsets = [0, 0], sizes = [8, 8], strides = [1, 1]} : vector<8x64xbf16> to vector<8x8xbf16>
    %15 = vector.extract_strided_slice %11 {offsets = [0, 32], sizes = [8, 8], strides = [1, 1]} : vector<8x64xbf16> to vector<8x8xbf16>
    %cst_11 = arith.constant dense<0.000000e+00> : vector<8x8xf32>
    %16 = tpu.matmul %13, %14, %cst_11 {dimension_numbers = #tpu.dot_dimension_numbers<[1], [1], [0], [0], [0, 0, 1, 0], [], []>} : vector<8x8xbf16>, vector<8x8xbf16>, vector<8x8xf32> -> vector<8x8xf32>
    %cst_12 = arith.constant dense<0xFF800000> : vector<8xf32>
    %17 = vector.multi_reduction <maximumf>, %16, %cst_12 [1] : vector<8x8xf32> to vector<8xf32>
    %18 = vector.shape_cast %17 : vector<8xf32> to vector<8x1xf32>
    %19 = vector.broadcast %18 : vector<8x1xf32> to vector<8x8xf32>
    %20 = arith.subf %16, %19 : vector<8x8xf32>
    %21 = math.exp %20 : vector<8x8xf32>
    %cst_13 = arith.constant dense<0.000000e+00> : vector<8xf32>
    %22 = vector.multi_reduction <add>, %21, %cst_13 [1] : vector<8x8xf32> to vector<8xf32>
    %23 = vector.shape_cast %22 : vector<8xf32> to vector<8x1xf32>
    %24 = tpu.reciprocal %23 {approx = true} : vector<8x1xf32> -> vector<8x1xf32>
    %25 = vector.broadcast %24 : vector<8x1xf32> to vector<8x8xf32>
    %26 = arith.mulf %21, %25 : vector<8x8xf32>
    %27 = arith.truncf %26 : vector<8x8xf32> to vector<8x8xbf16>
    %cst_14 = arith.constant dense<0.000000e+00> : vector<8x8xf32>
    %28 = tpu.matmul %27, %15, %cst_14 {dimension_numbers = #tpu.dot_dimension_numbers<[1], [0], [0], [1], [0, 0, 1, 1], [], []>} : vector<8x8xbf16>, vector<8x8xbf16>, vector<8x8xf32> -> vector<8x8xf32>
    %29 = arith.truncf %28 : vector<8x8xf32> to vector<8x8xbf16>
    %c0_15 = arith.constant 0 : index
    %c0_16 = arith.constant 0 : index
    %30 = vector.load %arg9[%c0_15, %c0_16] : memref<8x32xbf16, #tpu.memory_space<vmem>>, vector<8x8xbf16>
    tpu.vector_store %arg9[%c0_15, %c0_16], %29 {strides = array<i32>} : memref<8x32xbf16, #tpu.memory_space<vmem>>, vector<8x8xbf16>,
    %31 = vector.extract_strided_slice %8 {offsets = [0, 8], sizes = [8, 8], strides = [1, 1]} : vector<8x32xf32> to vector<8x8xf32>
    %32 = arith.truncf %31 : vector<8x8xf32> to vector<8x8xbf16>
    %33 = vector.extract_strided_slice %11 {offsets = [0, 8], sizes = [8, 8], strides = [1, 1]} : vector<8x64xbf16> to vector<8x8xbf16>
    %34 = vector.extract_strided_slice %11 {offsets = [0, 40], sizes = [8, 8], strides = [1, 1]} : vector<8x64xbf16> to vector<8x8xbf16>
    %cst_17 = arith.constant dense<0.000000e+00> : vector<8x8xf32>
    %35 = tpu.matmul %32, %33, %cst_17 {dimension_numbers = #tpu.dot_dimension_numbers<[1], [1], [0], [0], [0, 0, 1, 0], [], []>} : vector<8x8xbf16>, vector<8x8xbf16>, vector<8x8xf32> -> vector<8x8xf32>
    %cst_18 = arith.constant dense<0xFF800000> : vector<8xf32>
    %36 = vector.multi_reduction <maximumf>, %35, %cst_18 [1] : vector<8x8xf32> to vector<8xf32>
    %37 = vector.shape_cast %36 : vector<8xf32> to vector<8x1xf32>
    %38 = vector.broadcast %37 : vector<8x1xf32> to vector<8x8xf32>
    %39 = arith.subf %35, %38 : vector<8x8xf32>
    %40 = math.exp %39 : vector<8x8xf32>
    %cst_19 = arith.constant dense<0.000000e+00> : vector<8xf32>
    %41 = vector.multi_reduction <add>, %40, %cst_19 [1] : vector<8x8xf32> to vector<8xf32>
    %42 = vector.shape_cast %41 : vector<8xf32> to vector<8x1xf32>
    %43 = tpu.reciprocal %42 {approx = true} : vector<8x1xf32> -> vector<8x1xf32>
    %44 = vector.broadcast %43 : vector<8x1xf32> to vector<8x8xf32>
    %45 = arith.mulf %40, %44 : vector<8x8xf32>
    %46 = arith.truncf %45 : vector<8x8xf32> to vector<8x8xbf16>
    %cst_20 = arith.constant dense<0.000000e+00> : vector<8x8xf32>
    %47 = tpu.matmul %46, %34, %cst_20 {dimension_numbers = #tpu.dot_dimension_numbers<[1], [0], [0], [1], [0, 0, 1, 1], [], []>} : vector<8x8xbf16>, vector<8x8xbf16>, vector<8x8xf32> -> vector<8x8xf32>
    %48 = arith.truncf %47 : vector<8x8xf32> to vector<8x8xbf16>
    %c0_21 = arith.constant 0 : index
    %c8 = arith.constant 8 : index
    %49 = vector.load %arg9[%c0_21, %c8] : memref<8x32xbf16, #tpu.memory_space<vmem>>, vector<8x8xbf16>
    tpu.vector_store %arg9[%c0_21, %c8], %48 {strides = array<i32>} : memref<8x32xbf16, #tpu.memory_space<vmem>>, vector<8x8xbf16>,
    %50 = vector.extract_strided_slice %8 {offsets = [0, 16], sizes = [8, 8], strides = [1, 1]} : vector<8x32xf32> to vector<8x8xf32>
    %51 = arith.truncf %50 : vector<8x8xf32> to vector<8x8xbf16>
    %52 = vector.extract_strided_slice %11 {offsets = [0, 16], sizes = [8, 8], strides = [1, 1]} : vector<8x64xbf16> to vector<8x8xbf16>
    %53 = vector.extract_strided_slice %11 {offsets = [0, 48], sizes = [8, 8], strides = [1, 1]} : vector<8x64xbf16> to vector<8x8xbf16>
    %cst_22 = arith.constant dense<0.000000e+00> : vector<8x8xf32>
    %54 = tpu.matmul %51, %52, %cst_22 {dimension_numbers = #tpu.dot_dimension_numbers<[1], [1], [0], [0], [0, 0, 1, 0], [], []>} : vector<8x8xbf16>, vector<8x8xbf16>, vector<8x8xf32> -> vector<8x8xf32>
    %cst_23 = arith.constant dense<0xFF800000> : vector<8xf32>
    %55 = vector.multi_reduction <maximumf>, %54, %cst_23 [1] : vector<8x8xf32> to vector<8xf32>
    %56 = vector.shape_cast %55 : vector<8xf32> to vector<8x1xf32>
    %57 = vector.broadcast %56 : vector<8x1xf32> to vector<8x8xf32>
    %58 = arith.subf %54, %57 : vector<8x8xf32>
    %59 = math.exp %58 : vector<8x8xf32>
    %cst_24 = arith.constant dense<0.000000e+00> : vector<8xf32>
    %60 = vector.multi_reduction <add>, %59, %cst_24 [1] : vector<8x8xf32> to vector<8xf32>
    %61 = vector.shape_cast %60 : vector<8xf32> to vector<8x1xf32>
    %62 = tpu.reciprocal %61 {approx = true} : vector<8x1xf32> -> vector<8x1xf32>
    %63 = vector.broadcast %62 : vector<8x1xf32> to vector<8x8xf32>
    %64 = arith.mulf %59, %63 : vector<8x8xf32>
    %65 = arith.truncf %64 : vector<8x8xf32> to vector<8x8xbf16>
    %cst_25 = arith.constant dense<0.000000e+00> : vector<8x8xf32>
    %66 = tpu.matmul %65, %53, %cst_25 {dimension_numbers = #tpu.dot_dimension_numbers<[1], [0], [0], [1], [0, 0, 1, 1], [], []>} : vector<8x8xbf16>, vector<8x8xbf16>, vector<8x8xf32> -> vector<8x8xf32>
    %67 = arith.truncf %66 : vector<8x8xf32> to vector<8x8xbf16>
    %c0_26 = arith.constant 0 : index
    %c16 = arith.constant 16 : index
    %68 = vector.load %arg9[%c0_26, %c16] : memref<8x32xbf16, #tpu.memory_space<vmem>>, vector<8x8xbf16>
    tpu.vector_store %arg9[%c0_26, %c16], %67 {strides = array<i32>} : memref<8x32xbf16, #tpu.memory_space<vmem>>, vector<8x8xbf16>,
    %69 = vector.extract_strided_slice %8 {offsets = [0, 24], sizes = [8, 8], strides = [1, 1]} : vector<8x32xf32> to vector<8x8xf32>
    %70 = arith.truncf %69 : vector<8x8xf32> to vector<8x8xbf16>
    %71 = vector.extract_strided_slice %11 {offsets = [0, 24], sizes = [8, 8], strides = [1, 1]} : vector<8x64xbf16> to vector<8x8xbf16>
    %72 = vector.extract_strided_slice %11 {offsets = [0, 56], sizes = [8, 8], strides = [1, 1]} : vector<8x64xbf16> to vector<8x8xbf16>
    %cst_27 = arith.constant dense<0.000000e+00> : vector<8x8xf32>
    %73 = tpu.matmul %70, %71, %cst_27 {dimension_numbers = #tpu.dot_dimension_numbers<[1], [1], [0], [0], [0, 0, 1, 0], [], []>} : vector<8x8xbf16>, vector<8x8xbf16>, vector<8x8xf32> -> vector<8x8xf32>
    %cst_28 = arith.constant dense<0xFF800000> : vector<8xf32>
    %74 = vector.multi_reduction <maximumf>, %73, %cst_28 [1] : vector<8x8xf32> to vector<8xf32>
    %75 = vector.shape_cast %74 : vector<8xf32> to vector<8x1xf32>
    %76 = vector.broadcast %75 : vector<8x1xf32> to vector<8x8xf32>
    %77 = arith.subf %73, %76 : vector<8x8xf32>
    %78 = math.exp %77 : vector<8x8xf32>
    %cst_29 = arith.constant dense<0.000000e+00> : vector<8xf32>
    %79 = vector.multi_reduction <add>, %78, %cst_29 [1] : vector<8x8xf32> to vector<8xf32>
    %80 = vector.shape_cast %79 : vector<8xf32> to vector<8x1xf32>
    %81 = tpu.reciprocal %80 {approx = true} : vector<8x1xf32> -> vector<8x1xf32>
    %82 = vector.broadcast %81 : vector<8x1xf32> to vector<8x8xf32>
    %83 = arith.mulf %78, %82 : vector<8x8xf32>
    %84 = arith.truncf %83 : vector<8x8xf32> to vector<8x8xbf16>
    %cst_30 = arith.constant dense<0.000000e+00> : vector<8x8xf32>
    %85 = tpu.matmul %84, %72, %cst_30 {dimension_numbers = #tpu.dot_dimension_numbers<[1], [0], [0], [1], [0, 0, 1, 1], [], []>} : vector<8x8xbf16>, vector<8x8xbf16>, vector<8x8xf32> -> vector<8x8xf32>
    %86 = arith.truncf %85 : vector<8x8xf32> to vector<8x8xbf16>
    %c0_31 = arith.constant 0 : index
    %c24 = arith.constant 24 : index
    %87 = vector.load %arg9[%c0_31, %c24] : memref<8x32xbf16, #tpu.memory_space<vmem>>, vector<8x8xbf16>
    tpu.vector_store %arg9[%c0_31, %c24], %86 {strides = array<i32>} : memref<8x32xbf16, #tpu.memory_space<vmem>>, vector<8x8xbf16>,
    %c0_32 = arith.constant 0 : index
    %c0_33 = arith.constant 0 : index
    %88 = vector.load %arg9[%c0_32, %c0_33] : memref<8x32xbf16, #tpu.memory_space<vmem>>, vector<8x32xbf16>
    %c0_34 = arith.constant 0 : index
    %c0_35 = arith.constant 0 : index
    %89 = vector.load %arg5[%c0_34, %c0_35] : memref<32x32xbf16, #tpu.memory_space<vmem>>, vector<32x32xbf16>
    %cst_36 = arith.constant dense<0.000000e+00> : vector<8x32xf32>
    %90 = tpu.matmul %88, %89, %cst_36 {dimension_numbers = #tpu.dot_dimension_numbers<[1], [0], [0], [1], [0, 0, 1, 1], [], []>} : vector<8x32xbf16>, vector<32x32xbf16>, vector<8x32xf32> -> vector<8x32xf32>
    %91 = arith.addf %4, %90 : vector<8x32xf32>
    %cst_37 = arith.constant dense<0.000000e+00> : vector<8xf32>
    %92 = vector.multi_reduction <add>, %91, %cst_37 [1] : vector<8x32xf32> to vector<8xf32>
    %93 = vector.shape_cast %92 : vector<8xf32> to vector<8x1xf32>
    %cst_38 = arith.constant 3.200000e+01 : f32
    %94 = vector.broadcast %cst_38 : f32 to vector<8x1xf32>
    %95 = arith.divf %93, %94 : vector<8x1xf32>
    %96 = vector.broadcast %95 : vector<8x1xf32> to vector<8x32xf32>
    %97 = arith.subf %91, %96 : vector<8x32xf32>
    %98 = arith.mulf %97, %97 : vector<8x32xf32>
    %cst_39 = arith.constant dense<0.000000e+00> : vector<8xf32>
    %99 = vector.multi_reduction <add>, %98, %cst_39 [1] : vector<8x32xf32> to vector<8xf32>
    %100 = vector.shape_cast %99 : vector<8xf32> to vector<8x1xf32>
    %cst_40 = arith.constant 3.200000e+01 : f32
    %101 = vector.broadcast %cst_40 : f32 to vector<8x1xf32>
    %102 = arith.divf %100, %101 : vector<8x1xf32>
    %103 = vector.broadcast %95 : vector<8x1xf32> to vector<8x32xf32>
    %104 = arith.subf %91, %103 : vector<8x32xf32>
    %cst_41 = arith.constant 9.99999974E-6 : f32
    %105 = vector.broadcast %cst_41 : f32 to vector<8x1xf32>
    %106 = arith.addf %102, %105 : vector<8x1xf32>
    %107 = math.rsqrt %106 : vector<8x1xf32>
    %108 = vector.broadcast %107 : vector<8x1xf32> to vector<8x32xf32>
    %109 = arith.mulf %104, %108 : vector<8x32xf32>
    %c0_42 = arith.constant 0 : index
    %c0_43 = arith.constant 0 : index
    %110 = vector.load %arg6[%c0_42, %c0_43] : memref<1x32xf32, #tpu.memory_space<vmem>>, vector<1x32xf32>
    %111 = vector.broadcast %110 : vector<1x32xf32> to vector<8x32xf32>
    %112 = arith.mulf %109, %111 : vector<8x32xf32>
    %c0_44 = arith.constant 0 : index
    %c0_45 = arith.constant 0 : index
    %113 = vector.load %arg7[%c0_44, %c0_45] : memref<1x32xf32, #tpu.memory_space<vmem>>, vector<1x32xf32>
    %114 = vector.broadcast %113 : vector<1x32xf32> to vector<8x32xf32>
    %115 = arith.addf %112, %114 : vector<8x32xf32>
    %116 = arith.truncf %115 : vector<8x32xf32> to vector<8x32xbf16>
    %c0_46 = arith.constant 0 : index
    %c0_47 = arith.constant 0 : index
    %c0_48 = arith.constant 0 : index
    %117 = vector.load %arg8[%c0_46, %c0_47, %c0_48] : memref<1x8x32xbf16, #tpu.memory_space<vmem>>, vector<1x8x32xbf16>
    %118 = vector.shape_cast %117 : vector<1x8x32xbf16> to vector<8x32xbf16>
    %119 = vector.shape_cast %116 : vector<8x32xbf16> to vector<1x8x32xbf16>
    tpu.vector_store %arg8[%c0_46, %c0_47, %c0_48], %119 {strides = array<i32>} : memref<1x8x32xbf16, #tpu.memory_space<vmem>>, vector<1x8x32xbf16>,
    return
  }
  func.func @transform_0(%arg0: i32, %arg1: i32) -> (i32, i32, i32) {
    %c0_i32 = arith.constant 0 : i32
    %c0_i32_0 = arith.constant 0 : i32
    %c0_i32_1 = arith.constant 0 : i32
    return %arg0, %c0_i32, %c0_i32_0 : i32, i32, i32
  }
  func.func @transform_1(%arg0: i32, %arg1: i32) -> (i32, i32) {
    %c0_i32 = arith.constant 0 : i32
    %c0_i32_0 = arith.constant 0 : i32
    %c0_i32_1 = arith.constant 0 : i32
    return %c0_i32, %c0_i32_0 : i32, i32
  }
  func.func @transform_2(%arg0: i32, %arg1: i32) -> (i32, i32) {
    %c0_i32 = arith.constant 0 : i32
    %c0_i32_0 = arith.constant 0 : i32
    %c0_i32_1 = arith.constant 0 : i32
    return %c0_i32, %c0_i32_0 : i32, i32
  }
  func.func @transform_3(%arg0: i32, %arg1: i32) -> (i32, i32) {
    %c0_i32 = arith.constant 0 : i32
    %c0_i32_0 = arith.constant 0 : i32
    %c0_i32_1 = arith.constant 0 : i32
    return %c0_i32, %c0_i32_0 : i32, i32
  }
  func.func @transform_4(%arg0: i32, %arg1: i32) -> (i32, i32) {
    %c0_i32 = arith.constant 0 : i32
    %c0_i32_0 = arith.constant 0 : i32
    %c0_i32_1 = arith.constant 0 : i32
    return %c0_i32, %c0_i32_0 : i32, i32
  }
  func.func @transform_5(%arg0: i32, %arg1: i32) -> (i32, i32) {
    %c0_i32 = arith.constant 0 : i32
    %c0_i32_0 = arith.constant 0 : i32
    %c0_i32_1 = arith.constant 0 : i32
    return %c0_i32, %c0_i32_0 : i32, i32
  }
  func.func @transform_6(%arg0: i32, %arg1: i32) -> (i32, i32, i32) {
    %c0_i32 = arith.constant 0 : i32
    %c0_i32_0 = arith.constant 0 : i32
    return %arg0, %arg1, %c0_i32 : i32, i32, i32
  }
}

module attributes {stable_mosaic.version = 11 : i64} {
  func.func @_ffn_ln_kernel(%arg0: i32, %arg1: memref<16x32xbf16, #tpu.memory_space<vmem>>, %arg2: memref<32x64xbf16, #tpu.memory_space<vmem>>, %arg3: memref<1x64xf32, #tpu.memory_space<vmem>>, %arg4: memref<64x32xbf16, #tpu.memory_space<vmem>>, %arg5: memref<1x32xf32, #tpu.memory_space<vmem>>, %arg6: memref<1x32xf32, #tpu.memory_space<vmem>>, %arg7: memref<1x32xf32, #tpu.memory_space<vmem>>, %arg8: memref<16x32xbf16, #tpu.memory_space<vmem>>) attributes {dimension_semantics = [#tpu.dimension_semantics<parallel>], iteration_bounds = array<i64: 1>, scalar_prefetch = 0 : i64, scratch_operands = 0 : i64, tpu.core_type = #tpu.core_type<tc>, window_params = [{transform_indices = @transform_0, window_bounds = array<i64: 16, 32>}, {pipeline_mode = #tpu.pipeline_mode<synchronous>, transform_indices = @transform_1, window_bounds = array<i64: 32, 64>}, {pipeline_mode = #tpu.pipeline_mode<synchronous>, transform_indices = @transform_2, window_bounds = array<i64: 1, 64>}, {pipeline_mode = #tpu.pipeline_mode<synchronous>, transform_indices = @transform_3, window_bounds = array<i64: 64, 32>}, {pipeline_mode = #tpu.pipeline_mode<synchronous>, transform_indices = @transform_4, window_bounds = array<i64: 1, 32>}, {pipeline_mode = #tpu.pipeline_mode<synchronous>, transform_indices = @transform_5, window_bounds = array<i64: 1, 32>}, {pipeline_mode = #tpu.pipeline_mode<synchronous>, transform_indices = @transform_6, window_bounds = array<i64: 1, 32>}, {transform_indices = @transform_7, window_bounds = array<i64: 16, 32>}]} {
    %c0 = arith.constant 0 : index
    %c0_0 = arith.constant 0 : index
    %0 = vector.load %arg1[%c0, %c0_0] : memref<16x32xbf16, #tpu.memory_space<vmem>>, vector<16x32xbf16>
    %1 = arith.extf %0 : vector<16x32xbf16> to vector<16x32xf32>
    %c0_1 = arith.constant 0 : index
    %c0_2 = arith.constant 0 : index
    %2 = vector.load %arg2[%c0_1, %c0_2] : memref<32x64xbf16, #tpu.memory_space<vmem>>, vector<32x64xbf16>
    %cst = arith.constant dense<0.000000e+00> : vector<16x64xf32>
    %3 = tpu.matmul %0, %2, %cst {dimension_numbers = #tpu.dot_dimension_numbers<[1], [0], [0], [1], [0, 0, 1, 1], [], []>} : vector<16x32xbf16>, vector<32x64xbf16>, vector<16x64xf32> -> vector<16x64xf32>
    %c0_3 = arith.constant 0 : index
    %c0_4 = arith.constant 0 : index
    %4 = vector.load %arg3[%c0_3, %c0_4] : memref<1x64xf32, #tpu.memory_space<vmem>>, vector<1x64xf32>
    %5 = vector.broadcast %4 : vector<1x64xf32> to vector<16x64xf32>
    %6 = arith.addf %3, %5 : vector<16x64xf32>
    %cst_5 = arith.constant 0.000000e+00 : f32
    %7 = vector.broadcast %cst_5 : f32 to vector<16x64xf32>
    %8 = arith.maximumf %6, %7 : vector<16x64xf32>
    %9 = arith.truncf %8 : vector<16x64xf32> to vector<16x64xbf16>
    %c0_6 = arith.constant 0 : index
    %c0_7 = arith.constant 0 : index
    %10 = vector.load %arg4[%c0_6, %c0_7] : memref<64x32xbf16, #tpu.memory_space<vmem>>, vector<64x32xbf16>
    %cst_8 = arith.constant dense<0.000000e+00> : vector<16x32xf32>
    %11 = tpu.matmul %9, %10, %cst_8 {dimension_numbers = #tpu.dot_dimension_numbers<[1], [0], [0], [1], [0, 0, 1, 1], [], []>} : vector<16x64xbf16>, vector<64x32xbf16>, vector<16x32xf32> -> vector<16x32xf32>
    %c0_9 = arith.constant 0 : index
    %c0_10 = arith.constant 0 : index
    %12 = vector.load %arg5[%c0_9, %c0_10] : memref<1x32xf32, #tpu.memory_space<vmem>>, vector<1x32xf32>
    %13 = vector.broadcast %12 : vector<1x32xf32> to vector<16x32xf32>
    %14 = arith.addf %11, %13 : vector<16x32xf32>
    %15 = arith.addf %1, %14 : vector<16x32xf32>
    %cst_11 = arith.constant dense<0.000000e+00> : vector<16xf32>
    %16 = vector.multi_reduction <add>, %15, %cst_11 [1] : vector<16x32xf32> to vector<16xf32>
    %17 = vector.shape_cast %16 : vector<16xf32> to vector<16x1xf32>
    %cst_12 = arith.constant 3.200000e+01 : f32
    %18 = vector.broadcast %cst_12 : f32 to vector<16x1xf32>
    %19 = arith.divf %17, %18 : vector<16x1xf32>
    %20 = vector.broadcast %19 : vector<16x1xf32> to vector<16x32xf32>
    %21 = arith.subf %15, %20 : vector<16x32xf32>
    %22 = arith.mulf %21, %21 : vector<16x32xf32>
    %cst_13 = arith.constant dense<0.000000e+00> : vector<16xf32>
    %23 = vector.multi_reduction <add>, %22, %cst_13 [1] : vector<16x32xf32> to vector<16xf32>
    %24 = vector.shape_cast %23 : vector<16xf32> to vector<16x1xf32>
    %cst_14 = arith.constant 3.200000e+01 : f32
    %25 = vector.broadcast %cst_14 : f32 to vector<16x1xf32>
    %26 = arith.divf %24, %25 : vector<16x1xf32>
    %27 = vector.broadcast %19 : vector<16x1xf32> to vector<16x32xf32>
    %28 = arith.subf %15, %27 : vector<16x32xf32>
    %cst_15 = arith.constant 9.99999974E-6 : f32
    %29 = vector.broadcast %cst_15 : f32 to vector<16x1xf32>
    %30 = arith.addf %26, %29 : vector<16x1xf32>
    %31 = math.rsqrt %30 : vector<16x1xf32>
    %32 = vector.broadcast %31 : vector<16x1xf32> to vector<16x32xf32>
    %33 = arith.mulf %28, %32 : vector<16x32xf32>
    %c0_16 = arith.constant 0 : index
    %c0_17 = arith.constant 0 : index
    %34 = vector.load %arg6[%c0_16, %c0_17] : memref<1x32xf32, #tpu.memory_space<vmem>>, vector<1x32xf32>
    %35 = vector.broadcast %34 : vector<1x32xf32> to vector<16x32xf32>
    %36 = arith.mulf %33, %35 : vector<16x32xf32>
    %c0_18 = arith.constant 0 : index
    %c0_19 = arith.constant 0 : index
    %37 = vector.load %arg7[%c0_18, %c0_19] : memref<1x32xf32, #tpu.memory_space<vmem>>, vector<1x32xf32>
    %38 = vector.broadcast %37 : vector<1x32xf32> to vector<16x32xf32>
    %39 = arith.addf %36, %38 : vector<16x32xf32>
    %40 = arith.truncf %39 : vector<16x32xf32> to vector<16x32xbf16>
    %c0_20 = arith.constant 0 : index
    %c0_21 = arith.constant 0 : index
    %41 = vector.load %arg8[%c0_20, %c0_21] : memref<16x32xbf16, #tpu.memory_space<vmem>>, vector<16x32xbf16>
    tpu.vector_store %arg8[%c0_20, %c0_21], %40 {strides = array<i32>} : memref<16x32xbf16, #tpu.memory_space<vmem>>, vector<16x32xbf16>,
    return
  }
  func.func @transform_0(%arg0: i32) -> (i32, i32) {
    %c0_i32 = arith.constant 0 : i32
    %c0_i32_0 = arith.constant 0 : i32
    return %arg0, %c0_i32 : i32, i32
  }
  func.func @transform_1(%arg0: i32) -> (i32, i32) {
    %c0_i32 = arith.constant 0 : i32
    %c0_i32_0 = arith.constant 0 : i32
    %c0_i32_1 = arith.constant 0 : i32
    return %c0_i32, %c0_i32_0 : i32, i32
  }
  func.func @transform_2(%arg0: i32) -> (i32, i32) {
    %c0_i32 = arith.constant 0 : i32
    %c0_i32_0 = arith.constant 0 : i32
    %c0_i32_1 = arith.constant 0 : i32
    return %c0_i32, %c0_i32_0 : i32, i32
  }
  func.func @transform_3(%arg0: i32) -> (i32, i32) {
    %c0_i32 = arith.constant 0 : i32
    %c0_i32_0 = arith.constant 0 : i32
    %c0_i32_1 = arith.constant 0 : i32
    return %c0_i32, %c0_i32_0 : i32, i32
  }
  func.func @transform_4(%arg0: i32) -> (i32, i32) {
    %c0_i32 = arith.constant 0 : i32
    %c0_i32_0 = arith.constant 0 : i32
    %c0_i32_1 = arith.constant 0 : i32
    return %c0_i32, %c0_i32_0 : i32, i32
  }
  func.func @transform_5(%arg0: i32) -> (i32, i32) {
    %c0_i32 = arith.constant 0 : i32
    %c0_i32_0 = arith.constant 0 : i32
    %c0_i32_1 = arith.constant 0 : i32
    return %c0_i32, %c0_i32_0 : i32, i32
  }
  func.func @transform_6(%arg0: i32) -> (i32, i32) {
    %c0_i32 = arith.constant 0 : i32
    %c0_i32_0 = arith.constant 0 : i32
    %c0_i32_1 = arith.constant 0 : i32
    return %c0_i32, %c0_i32_0 : i32, i32
  }
  func.func @transform_7(%arg0: i32) -> (i32, i32) {
    %c0_i32 = arith.constant 0 : i32
    %c0_i32_0 = arith.constant 0 : i32
    return %arg0, %c0_i32 : i32, i32
  }
}

</mosaic_0001>

<bundles_post_ra>
// kernel: encoder_seq_forward.5
= control target key start
LH: loop header
LB: loop body
LE: loop exit
PB: predicated region body
PF: predicated region fallthrough
CT: control target
= control target key end

     0   :  { %vm30_vm0 = vcmask 1041408   ;;  %v106_v0 = vmov 0.0   ;;  %vm107_vm1 = vmmov 0   ;;  %vm26_vm2 = vcmask 31744   ;;  %s146_s1 = inlined_call_operand.vmem [shape: bf16[4,32], index: 1, kind: input, shape index: {}]   ;;  %s147_s0 = inlined_call_operand.vmem [shape: f32[16,4], index: 0, kind: input, shape index: {}]   ;;  %s148_s2 = inlined_call_operand.vmem [shape: f32[1,32], index: 2, kind: input, shape index: {}]   ;;  %s149_s3 = inlined_call_operand.vmem [shape: bf16[16,32], index: 3, kind: output, shape index: {}]  }
   0x1   :  { %98 = vmatprep.subr.bf16.mxu0 %v106_v0  ;;  %v18_v1 = vld [vmem:[%s146_s1] sm:$0x3]  ;;  %100 = vmatprep.mubr.msk.bf16.mxu0 %vm107_vm1, %v106_v0  ;;  %v16_v3 = vld [vmem:[%s147_s0 + $0x8] sm:$0xff]  ;;  %vm83_vm3 = vcmask 257024  }
   0x2   :  { %v15_v2 = vld [vmem:[%s147_s0] sm:$0xff]  ;;  %v32_v4 = vsel %vm30_vm0, %v18_v1, 0 }
   0x3   :  { %v17_v5 = vpack.c.bf16 %v16_v3, %v15_v2  ;;  %99 = vmatpush3.bf16.msra.mxu0 %v32_v4  ;;  %v90_v6 = vld [vmem:[%s148_s2] ss:$0 sm:$0xff] }
   0x6   :  { %101 = vmatmul.mubr.msk.bf16.vlgmr.msra.gmra.mrb[0].mxu0 %vm26_vm2, %v17_v5 }
  0xd9   :  { %v68_v7 = vpop.f32.mrb[0].mxu0 }
  0xda   :  { %v69_v8 = vadd.f32 %v90_v6, %v68_v7  ;;  %v102_v9 = vpop.f32.mrb[1].mxu0 }
  0xdb   :  { %v71_v10 = vpop.f32.mrb[2].mxu0 }
  0xdc   :  { %v94_v11 = vpack.c.bf16 %v69_v8, %v69_v8  ;;  %v72_v12 = vadd.f32 %v90_v6, %v71_v10  ;;  %v103_v13 = vpop.f32.mrb[3].mxu0 }
  0xde   :  { %84 = vst.msk [vmem:[%s149_s3] sm:$0xf] %vm83_vm3, %v94_v11  ;;  %v95_v14 = vpack.c.bf16 %v72_v12, %v72_v12 }
  0xe0   :  { %85 = vst.msk [vmem:[%s149_s3 + $0x4] sm:$0xf] %vm83_vm3, %v95_v14 }

// kernel: encoder_seq_forward.7
= control target key start
LH: loop header
LB: loop body
LE: loop exit
PB: predicated region body
PF: predicated region fallthrough
CT: control target
= control target key end

     0   :  { %v312_v0 = vmov 0.0   ;;  %vm313_vm0 = vmmov 0   ;;  %vm59_vm1 = vcmask 261120   ;;  %vm146_vm2 = vcmask 523264   ;;  %s398_s1 = inlined_call_operand.vmem [shape: bf16[32,64], index: 1, kind: input, shape index: {}]   ;;  %s399_s0 = inlined_call_operand.vmem [shape: bf16[16,32], index: 0, kind: input, shape index: {}]   ;;  %s400_s3 = inlined_call_operand.vmem [shape: bf16[64,32], index: 3, kind: input, shape index: {}]   ;;  %s401_s2 = inlined_call_operand.vmem [shape: f32[1,64], index: 2, kind: input, shape index: {}]   ;;  %s402_s4 = inlined_call_operand.vmem [shape: f32[1,32], index: 4, kind: input, shape index: {}]   ;;  %s403_s5 = inlined_call_operand.vmem [shape: f32[1,32], index: 5, kind: input, shape index: {}]   ;;  %s404_s6 = inlined_call_operand.vmem [shape: f32[1,32], index: 6, kind: input, shape index: {}]   ;;  %s405_s7 = inlined_call_operand.vmem [shape: bf16[16,32], index: 7, kind: output, shape index: {}]  }
   0x1   :  { %278 = vmatprep.subr.bf16.mxu0 %v312_v0  ;;  %v300_v1 = vld [vmem:[%s398_s1] sm:$0xff]   ;;  %282 = vmatprep.mubr.msk.bf16.mxu0 %vm313_vm0, %v312_v0  ;;  %v301_v2 = vld [vmem:[%s398_s1 + $0x8] sm:$0xff]   ;;  %v305_v6 = vld [vmem:[%s400_s3 + $0x10] sm:$0xff]   ;;  %vm246_vm3 = vcmask 257024  }
   0x2   :  { %286 = vmatprep.subr.bf16.mxu1 %v312_v0  ;;  %294 = vmatprep.mubr.msk.bf16.mxu1 %vm313_vm0, %v312_v0  ;;  %v27_v3 = vld [vmem:[%s399_s0] sm:$0xff]   ;;  %v304_v5 = vld [vmem:[%s400_s3 + $0x8] sm:$0xff]   ;;  %v306_v7 = vld [vmem:[%s400_s3 + $0x18] sm:$0xff]  }
   0x3   :  { %279 = vmatpush3.bf16.msra.mxu0 %v300_v1  ;;  %v303_v4 = vld [vmem:[%s400_s3] sm:$0xff]   ;;  %v29_v19 = vunpack.c.l.bf16 %v27_v3  ;;  %v30_v23 = vunpack.c.h.bf16 %v27_v3 }
   0x4   :  { %280 = vmatprep.subr.bf16.mxu0 %v312_v0  ;;  %287 = vmatpush3.bf16.msra.mxu1 %v303_v4  ;;  %v253_v8 = vld [vmem:[%s401_s2] ss:$0 sm:$0xff] }
   0x5   :  { %288 = vmatprep.subr.bf16.mxu1 %v312_v0  ;;  %v258_v18 = vld [vmem:[%s402_s4] ss:$0 sm:$0xff] }
   0x6   :  { %v264_v48 = vld [vmem:[%s403_s5] ss:$0 sm:$0xff] }
   0x7   :  { %281 = vmatpush3.bf16.msra.mxu0 %v301_v2  ;;  %v265_v50 = vld [vmem:[%s404_s6] ss:$0 sm:$0xff] }
   0x8   :  { %289 = vmatpush3.bf16.msra.mxu1 %v304_v5 }
   0x9   :  { %290 = vmatprep.subr.bf16.mxu1 %v312_v0 }
   0xa   :  { %283 = vmatmul.mubr.msk.bf16.vlgmr.msra.gmra.mrb[0].mxu0 %vm59_vm1, %v27_v3 }
   0xc   :  { %291 = vmatpush3.bf16.msra.mxu1 %v305_v6 }
   0xd   :  { %292 = vmatprep.subr.bf16.mxu1 %v312_v0 }
  0x10   :  { %293 = vmatpush3.bf16.msra.mxu1 %v306_v7 }
  0xdd   :  { %v97_v9 = vpop.f32.mrb[0].mxu0 }
  0xde   :  { %v98_v10 = vadd.f32 %v253_v8, %v97_v9  ;;  %v284_v11 = vpop.f32.mrb[1].mxu0 }
  0xdf   :  { %v100_v12 = vpop.f32.mrb[2].mxu0 }
  0xe0   :  { %v101_v13 = vadd.f32 %v253_v8, %v100_v12  ;;  %v285_v14 = vpop.f32.mrb[3].mxu0  ;;  %v104_v15 = vmax.f32 %v98_v10, 0.0 }
  0xe2   :  { %v105_v16 = vmax.f32 %v101_v13, 0.0 }
  0xe4   :  { %v106_v17 = vpack.c.bf16 %v105_v16, %v104_v15 }
  0xe6   :  { %295 = vmatmul.mubr.msk.bf16.vlgmr.msra.gmra.mrb[0].mxu1 %vm146_vm2, %v106_v17 }
 0x1b9   :  { %v184_v20 = vpop.f32.mrb[0].mxu1 }
 0x1ba   :  { %v185_v21 = vadd.f32 %v258_v18, %v184_v20  ;;  %v296_v22 = vpop.f32.mrb[1].mxu1 }
 0x1bb   :  { %v187_v24 = vpop.f32.mrb[2].mxu1 }
 0x1bc   :  { %v188_v25 = vadd.f32 %v258_v18, %v187_v24  ;;  %v297_v26 = vpop.f32.mrb[3].mxu1  ;;  %v191_v27 = vadd.f32 %v185_v21, %v29_v19 }
 0x1be   :  { %v193_v28 = vsel %vm59_vm1, %v191_v27, 0.0  ;;  %v192_v29 = vadd.f32 %v188_v25, %v30_v23 }
 0x1bf   :  { %194 = vadd.xlane.f32.xlu0 %v193_v28 }
 0x1c0   :  { %v196_v30 = vsel %vm59_vm1, %v192_v29, 0.0 }
 0x1c3   :  { %197 = vadd.xlane.f32.xlu0 %v196_v30 }
 0x24c   :  { %v195_v31 = vpop.xlane.xlu0 %194 }
 0x24d   :  { %v200_v32 = vmul.f32 0.03125, %v195_v31 }
 0x24f   :  { %v202_v33 = vsub.f32 %v191_v27, %v200_v32 }
 0x250   :  { %v198_v34 = vpop.xlane.xlu0 %197 }
 0x251   :  { %v201_v35 = vmul.f32 0.03125, %v198_v34  ;;  %v204_v36 = vmul.f32 %v202_v33, %v202_v33 }
 0x253   :  { %v203_v37 = vsub.f32 %v192_v29, %v201_v35  ;;  %v206_v38 = vsel %vm59_vm1, %v204_v36, 0.0 }
 0x254   :  { %207 = vadd.xlane.f32.xlu1 %v206_v38 }
 0x255   :  { %v205_v39 = vmul.f32 %v203_v37, %v203_v37 }
 0x257   :  { %v209_v40 = vsel %vm59_vm1, %v205_v39, 0.0 }
 0x258   :  { %210 = vadd.xlane.f32.xlu1 %v209_v40 }
 0x2e1   :  { %v208_v41 = vpop.xlane.xlu1 %207 }
 0x2e2   :  { %v212_v42 = vmul.f32 0.03125, %v208_v41 }
 0x2e4   :  { %v214_v43 = vadd.f32 1e-05, %v212_v42 }
 0x2e5   :  { %v211_v44 = vpop.xlane.xlu1 %210 }
 0x2e6   :  { %308 = vrsqrt.f32 %v214_v43  ;;  %v213_v45 = vmul.f32 0.03125, %v211_v44 }
 0x2e8   :  { %v215_v46 = vadd.f32 1e-05, %v213_v45 }
 0x2ea   :  { %310 = vrsqrt.f32 %v215_v46 }
 0x2f0   :  { %v309_v47 = vpop.eup %308 }
 0x2f1   :  { %v218_v49 = vmul.f32 %v309_v47, %v202_v33 }
 0x2f3   :  { %v227_v51 = vmul.f32 %v264_v48, %v218_v49 }
 0x2f4   :  { %v311_v52 = vpop.eup %310 }
 0x2f5   :  { %v236_v53 = vadd.f32 %v265_v50, %v227_v51  ;;  %v219_v54 = vmul.f32 %v311_v52, %v203_v37 }
 0x2f7   :  { %v268_v55 = vpack.c.bf16 %v236_v53, %v236_v53  ;;  %v228_v56 = vmul.f32 %v264_v48, %v219_v54 }
 0x2f9   :  { %247 = vst.msk [vmem:[%s405_s7] sm:$0xf] %vm246_vm3, %v268_v55  ;;  %v237_v57 = vadd.f32 %v265_v50, %v228_v56 }
 0x2fb   :  { %v269_v58 = vpack.c.bf16 %v237_v57, %v237_v57 }
 0x2fd   :  { %248 = vst.msk [vmem:[%s405_s7 + $0x4] sm:$0xf] %vm246_vm3, %v269_v58 }

// kernel: encoder_seq_forward.6
= control target key start
LH: loop header
LB: loop body
LE: loop exit
PB: predicated region body
PF: predicated region fallthrough
CT: control target
= control target key end

     0   :  { %s1286_s21 = smov 0   ;;  %s1288_s22 = smov 0   ;;  %s1430_s0 = inlined_call_operand.vmem [shape: bf16[2,8,32], index: 0, kind: input, shape index: {}]   ;;  %s1431_s1 = inlined_call_operand.vmem [shape: bf16[32,32], index: 1, kind: input, shape index: {}]   ;;  %s1432_s2 = inlined_call_operand.vmem [shape: bf16[32,64], index: 2, kind: input, shape index: {}]   ;;  %s1433_s3 = inlined_call_operand.vmem [shape: bf16[32,32], index: 3, kind: input, shape index: {}]   ;;  %s1434_s4 = inlined_call_operand.vmem [shape: f32[1,32], index: 4, kind: input, shape index: {}]   ;;  %s1435_s5 = inlined_call_operand.vmem [shape: f32[1,32], index: 5, kind: input, shape index: {}]   ;;  %s1436_s6 = inlined_call_operand.vmem [shape: bf16[2,8,32], index: 6, kind: output, shape index: {}]  }
   0x1   :  { %s1290_s23 = smov 0  }
   0x2 LB: > { %s28_s24 = sadd.s32 1, %s1233_s22  ;;  %p1028_p0 = scmp.ge.s32.totalorder %s1237_s23, 1  ;;  %s1237_s23 = sphi %s1290_s23, %s16_s23   ;;  %s1233_s22 = sphi %s1288_s22, %s1438_s22   ;;  %s1229_s21 = sphi %s1286_s21, %s1437_s21  }
   0x3   : > { %p30_p1 = scmp.ge.s32.totalorder %s28_s24, 2  ;;  %p225_p2 = scmp.lt.s32.totalorder %s1237_s23, 3 }
   0x5   : > { %s1440_s24 = smov (%p30_p1, %s28_s24), 0  ;;  %p226_p3 = pnand %p1028_p0, %p225_p2 }
   0x6   : > { %v1191_v0 = vld [vmem:[%s1432_s2] sm:$0xff] (!%p226_p3)   ;;  %v1239_v1 = vmov (!%p226_p3), 0.0   ;;  %v1193_v3 = vld [vmem:[%s1432_s2 + $0x8] sm:$0xff] (!%p226_p3)   ;;  %vm1240_vm0 = vmmov (!%p226_p3), 0   ;;  %p256_p4 = scmp.lt.s32.totalorder (!%p226_p3), %s1229_s21, 1  ;;  %vm286_vm1 = vcmask (!%p226_p3), 261120  }
   0x7   : > { %229 = sbr.rel (%p226_p3) target bundleno = 1775 (0x6ef), region = 44  ;;  %1091 = vmatprep.subr.bf16.mxu1 (!%p226_p3), %v1239_v1  ;;  %1083 = vmatprep.subr.bf16.mxu0 (!%p226_p3), %v1239_v1  ;;  %v1192_v2 = vld [vmem:[%s1431_s1] sm:$0xff] (!%p226_p3)   ;;  %v1194_v4 = vld [vmem:[%s1431_s1 + $0x8] sm:$0xff] (!%p226_p3)   ;;  %vm389_vm2 = vcmask (!%p226_p3), 64512   ;;  %s1241_s13 = smov (!%p226_p3), 112   ;;  %vm454_vm3 = vcmask (!%p226_p3), 1043456  }
   0x8   : > { %1092 = vmatpush3.bf16.msra.mxu1 (!%p226_p3), %v1191_v0  ;;  %1095 = vmatprep.mubr.msk.bf16.mxu1 (!%p226_p3), %vm1240_vm0, %v1239_v1  ;;  %s1242_s14 = smov (!%p226_p3), 120   ;;  %s1243_s15 = smov (!%p226_p3), 104   ;;  %vm499_vm4 = vcmask (!%p226_p3), 60416   ;;  %vm619_vm5 = vcmask (!%p226_p3), 126016   ;;  %vm738_vm6 = vcmask (!%p226_p3), 191616   ;;  %vm857_vm7 = vcmask (!%p226_p3), 257216  }
   0x9   : > { %1084 = vmatpush3.bf16.msra.mxu0 (!%p226_p3), %v1192_v2  ;;  %1093 = vmatprep.subr.bf16.mxu1 (!%p226_p3), %v1239_v1  ;;  %s1244_s16 = smov (!%p226_p3), 96   ;;  %s1245_s17 = smov (!%p226_p3), 80   ;;  %vm951_vm8 = vcmask (!%p226_p3), 257024  }
   0xa   : > { %1085 = vmatprep.subr.bf16.mxu0 (!%p226_p3), %v1239_v1  ;;  %1087 = vmatprep.mubr.msk.bf16.mxu0 (!%p226_p3), %vm1240_vm0, %v1239_v1  ;;  %s1246_s18 = smov (!%p226_p3), 72   ;;  %s1247_s19 = smov (!%p226_p3), 88  }
   0xb   : > { %s1248_s20 = smov (!%p226_p3), 8   ;;  %s1249_s29 = smov (!%p226_p3), 16  }
   0xc   : > { %1094 = vmatpush3.bf16.msra.mxu1 (!%p226_p3), %v1193_v3  ;;  %s1250_s30 = smov (!%p226_p3), 24  }
   0xd   : > { %1086 = vmatpush3.bf16.msra.mxu0 (!%p226_p3), %v1194_v4  ;;  %1105 = vmatprep.subr.bf16.mxu1 (!%p226_p3), %v1239_v1 }
   0xe   : > { %s1442_s21 = smov (!%p256_p4, %s1229_s21), 1  ;;  %1099 = vmatprep.subr.bf16.mxu0 %v1239_v1 }
   0xf   : > { %s1029_s9 = sshll.u32 %s1442_s21, 2 }
  0x10   : > { %s259_s12 = scalar_lea.vmem %s1430_s0, %s1029_s9 }
  0x11   : > { %v1333_v5 = vld [vmem:[%s259_s12] sm:$0xf] }
  0x12   : > { %1096 = vmatmul.mubr.msk.bf16.vlgmr.msra.gmra.mrb[0].mxu1 %vm286_vm1, %v1333_v5  ;;  %1088 = vmatmul.mubr.msk.bf16.vlgmr.msra.gmra.mrb[0].mxu0 %vm286_vm1, %v1333_v5 }
  0x13   : > { %1107 = vmatprep.mubr.msk.bf16.mxu1 %vm1240_vm0, %v1239_v1  ;;  %1101 = vmatprep.mubr.msk.bf16.mxu0 %vm1240_vm0, %v1239_v1 }
  0xe5   : > { %v381_v6 = vpop.f32.mrb[0].mxu1  ;;  %v324_v9 = vpop.f32.mrb[0].mxu0 }
  0xe6   : > { %v1344_v7 = vpack.c.bf16 %v381_v6, %v381_v6  ;;  %v1097_v8 = vpop.f32.mrb[1].mxu1  ;;  %v330_v10 = vmul.f32 0.35355338, %v324_v9  ;;  %v1089_v12 = vpop.f32.mrb[1].mxu0 }
  0xe7   : > { %v384_v11 = vpop.f32.mrb[2].mxu1  ;;  %v327_v15 = vpop.f32.mrb[2].mxu0 }
  0xe8   : > { %623 = vrot.lane.b32.xlu1 %v1344_v7, %s1241_s13  ;;  %504 = vrot.lane.b32.xlu0 %v1344_v7, %s1242_s14  ;;  %v1098_v13 = vpop.f32.mrb[3].mxu1  ;;  %v394_v14 = vsel %vm389_vm2, %v1344_v7, 0  ;;  %v388_v16 = vpack.c.bf16 %v330_v10, %v330_v10  ;;  %v1090_v17 = vpop.f32.mrb[3].mxu0 }
  0xe9   : > { %1100 = vmatpush3.bf16.xpose.msra.mxu0 %v394_v14 }
  0xea   : > { %1111 = vmatprep.subr.bf16.mxu0 %v1239_v1 }
  0xec   : > { %621 = vrot.lane.b32.xlu1 %v388_v16, %s1241_s13  ;;  %502 = vrot.lane.b32.xlu0 %v388_v16, %s1242_s14  ;;  %s266_s14 = scalar_lea.vmem %s1436_s6, %s1029_s9 }
  0xf0   : > { %740 = vrot.lane.b32.xlu1 %v388_v16, %s1243_s15  ;;  %742 = vrot.lane.b32.xlu0 %v1344_v7, %s1243_s15 }
  0xf1   : > { %1102 = vmatmul.mubr.msk.bf16.vlgmr.msra.gmra.mrb[4].mxu0 %vm389_vm2, %v388_v16 }
  0xf2   : > { %1113 = vmatprep.mubr.msk.bf16.mxu0 %vm1240_vm0, %v1239_v1 }
 0x15a   : > { %v505_v18 = vpop.permute.xlu0 %504  ;;  %v624_v20 = vpop.permute.xlu1 %623 }
 0x15b   : > { %v510_v19 = vsel %vm389_vm2, %v505_v18, 0  ;;  %v629_v22 = vsel %vm389_vm2, %v624_v20, 0 }
 0x15c   : > { %1112 = vmatpush3.bf16.xpose.msra.mxu0 %v510_v19 }
 0x15d   : > { %1123 = vmatprep.subr.bf16.mxu0 %v1239_v1 }
 0x15e   : > { %v503_v21 = vpop.permute.xlu0 %502  ;;  %v622_v24 = vpop.permute.xlu1 %621 }
 0x162   : > { %v743_v23 = vpop.permute.xlu0 %742  ;;  %v741_v26 = vpop.permute.xlu1 %740 }
 0x163   : > { %1114 = vmatmul.mubr.msk.bf16.vlgmr.msra.gmra.mrb[8].mxu0 %vm389_vm2, %v503_v21  ;;  %v748_v25 = vsel %vm389_vm2, %v743_v23, 0 }
 0x164   : > { %1124 = vmatpush3.bf16.xpose.msra.mxu0 %v629_v22  ;;  %1125 = vmatprep.mubr.msk.bf16.mxu0 %vm1240_vm0, %v1239_v1 }
 0x165   : > { %1135 = vmatprep.subr.bf16.mxu0 %v1239_v1 }
 0x16b   : > { %1126 = vmatmul.mubr.msk.bf16.vlgmr.msra.gmra.mrb[12].mxu0 %vm389_vm2, %v622_v24 }
 0x16c   : > { %1136 = vmatpush3.bf16.xpose.msra.mxu0 %v748_v25  ;;  %1137 = vmatprep.mubr.msk.bf16.mxu0 %vm1240_vm0, %v1239_v1 }
 0x16d   : > { %1147 = vmatprep.subr.bf16.mxu0 %v1239_v1 }
 0x173   : > { %1138 = vmatmul.mubr.msk.bf16.vlgmr.msra.gmra.mrb[16].mxu0 %vm389_vm2, %v741_v26 }
 0x174   : > { %1151 = vmatprep.mubr.msk.bf16.mxu0 %vm1240_vm0, %v1239_v1 }
 0x1c4   : > { %v430_v27 = vpop.f32.mrb[4].mxu0 }
 0x1c5   : > { %v1103_v28 = vpop.f32.mrb[5].mxu0  ;;  %v436_v29 = vsel %vm389_vm2, %v430_v27, -inf }
 0x1c6   : > { %437 = vmax.xlane.f32.xlu0 %v436_v29  ;;  %v433_v30 = vpop.f32.mrb[6].mxu0 }
 0x1c7   : > { %v1104_v31 = vpop.f32.mrb[7].mxu0 }
 0x236   : > { %v546_v32 = vpop.f32.mrb[8].mxu0 }
 0x237   : > { %v1115_v33 = vpop.f32.mrb[9].mxu0  ;;  %v552_v34 = vsel %vm389_vm2, %v546_v32, -inf }
 0x238   : > { %553 = vmax.xlane.f32.xlu1 %v552_v34  ;;  %v549_v35 = vpop.f32.mrb[10].mxu0 }
 0x239   : > { %v1116_v36 = vpop.f32.mrb[11].mxu0 }
 0x23e   : > { %v665_v37 = vpop.f32.mrb[12].mxu0 }
 0x23f   : > { %v1127_v38 = vpop.f32.mrb[13].mxu0  ;;  %v671_v39 = vsel %vm389_vm2, %v665_v37, -inf }
 0x240   : > { %672 = vmax.xlane.f32.xlu0 %v671_v39  ;;  %v668_v40 = vpop.f32.mrb[14].mxu0  ;;  %v1195_v39 = vld [vmem:[%s1433_s3] sm:$0xff]  }
 0x241   : > { %v1128_v41 = vpop.f32.mrb[15].mxu0  ;;  %1148 = vmatpush3.bf16.msra.mxu0 %v1195_v39 }
 0x242   : > { %v1196_v41 = vld [vmem:[%s1433_s3 + $0x8] sm:$0xff]   ;;  %1149 = vmatprep.subr.bf16.mxu0 %v1239_v1 }
 0x245   : > { %1150 = vmatpush3.bf16.msra.mxu0 %v1196_v41 }
 0x246   : > { %v784_v42 = vpop.f32.mrb[16].mxu0 }
 0x247   : > { %v1139_v43 = vpop.f32.mrb[17].mxu0  ;;  %v790_v44 = vsel %vm389_vm2, %v784_v42, -inf }
 0x248   : > { %791 = vmax.xlane.f32.xlu0 %v790_v44  ;;  %v787_v45 = vpop.f32.mrb[18].mxu0 }
 0x249   : > { %v1140_v46 = vpop.f32.mrb[19].mxu0 }
 0x253   : > { %v438_v47 = vpop.xlane.xlu0 %437 }
 0x254   : > { %v439_v48 = vsub.f32 %v430_v27, %v438_v47 }
 0x256   : > { %v440_v49 = vmul.f32 1.442695, %v439_v48 }
 0x258   : > { %1197 = vpow2.f32 %v440_v49 }
 0x262   : > { %v1198_v50 = vpop.eup %1197 }
 0x263   : > { %v442_v51 = vsel %vm389_vm2, %v1198_v50, 0.0 }
 0x264   : > { %443 = vadd.xlane.f32.xlu1 %v442_v51 }
 0x275   : > { %449 = vrot.lane.b32.xlu1 %v1344_v7, %s1244_s16 }
 0x2c5   : > { %v554_v52 = vpop.xlane.xlu1 %553 }
 0x2c6   : > { %v555_v53 = vsub.f32 %v546_v32, %v554_v52 }
 0x2c8   : > { %v556_v54 = vmul.f32 1.442695, %v555_v53 }
 0x2ca   : > { %1199 = vpow2.f32 %v556_v54  ;;  %v269_v54 = vunpack.c.l.bf16 %v1333_v5 }
 0x2cd   : > { %v673_v55 = vpop.xlane.xlu0 %672 }
 0x2ce   : > { %v674_v56 = vsub.f32 %v665_v37, %v673_v55 }
 0x2d0   : > { %v675_v57 = vmul.f32 1.442695, %v674_v56 }
 0x2d2   : > { %1201 = vpow2.f32 %v675_v57 }
 0x2d4   : > { %v1200_v58 = vpop.eup %1199 }
 0x2d5   : > { %v792_v59 = vpop.xlane.xlu0 %791  ;;  %v558_v60 = vsel %vm389_vm2, %v1200_v58, 0.0 }
 0x2d6   : > { %v793_v61 = vsub.f32 %v784_v42, %v792_v59  ;;  %559 = vadd.xlane.f32.xlu0 %v558_v60 }
 0x2d8   : > { %v794_v62 = vmul.f32 1.442695, %v793_v61 }
 0x2da   : > { %1203 = vpow2.f32 %v794_v62 }
 0x2dc   : > { %v1202_v63 = vpop.eup %1201 }
 0x2dd   : > { %v677_v0 = vsel %vm389_vm2, %v1202_v63, 0.0 }
 0x2de   : > { %678 = vadd.xlane.f32.xlu1 %v677_v0 }
 0x2e4   : > { %v1204_v2 = vpop.eup %1203 }
 0x2e5   : > { %v796_v3 = vsel %vm389_vm2, %v1204_v2, 0.0 }
 0x2e6   : > { %797 = vadd.xlane.f32.xlu0 %v796_v3 }
 0x2ef   : > { %683 = vrot.lane.b32.xlu1 %v1344_v7, %s1245_s17 }
 0x2f1   : > { %v444_v4 = vpop.xlane.xlu1 %443 }
 0x2f2   : > { %1205 = vrcp.f32 %v444_v4 }
 0x2f3   : > { %802 = vrot.lane.b32.xlu1 %v1344_v7, %s1246_s18 }
 0x2f5   : > { %v450_v6 = vpop.permute.xlu1 %449 }
 0x2f6   : > { %v456_v8 = vsel %vm454_vm3, %v450_v6, 0 }
 0x2f7   : > { %1106 = vmatpush3.bf16.msra.mxu1 %v456_v8  ;;  %v1051_v8 = vld [vmem:[%s1434_s4] ss:$0 sm:$0xff] }
 0x2f8   : > { %1117 = vmatprep.subr.bf16.mxu1 %v1239_v1 }
 0x2fc   : > { %v1206_v9 = vpop.eup %1205  ;;  %564 = vrot.lane.b32.xlu0 %v1344_v7, %s1247_s19 }
 0x2fd   : > { %v446_v10 = vmul.f32 %v1206_v9, %v1198_v50 }
 0x2ff   : > { %v447_v11 = vpack.c.bf16 %v446_v10, %v446_v10  ;;  %v1052_v10 = vld [vmem:[%s1435_s5] ss:$0 sm:$0xff] }
 0x301   : > { %1108 = vmatmul.mubr.msk.bf16.vlgmr.msra.gmra.mrb[4].mxu1 %vm389_vm2, %v447_v11 }
 0x302   : > { %1119 = vmatprep.mubr.msk.bf16.mxu1 %vm1240_vm0, %v1239_v1 }
 0x363   : > { %v560_v12 = vpop.xlane.xlu0 %559 }
 0x364   : > { %1207 = vrcp.f32 %v560_v12 }
 0x36b   : > { %v679_v13 = vpop.xlane.xlu1 %678 }
 0x36c   : > { %1209 = vrcp.f32 %v679_v13 }
 0x36e   : > { %v1208_v14 = vpop.eup %1207 }
 0x36f   : > { %v562_v16 = vmul.f32 %v1208_v14, %v1200_v58  ;;  %v684_v19 = vpop.permute.xlu1 %683 }
 0x370   : > { %v689_v21 = vsel %vm454_vm3, %v684_v19, 0 }
 0x371   : > { %v563_v7 = vpack.c.bf16 %v562_v16, %v562_v16 }
 0x373   : > { %v798_v15 = vpop.xlane.xlu0 %797  ;;  %v803_v23 = vpop.permute.xlu1 %802 }
 0x374   : > { %1211 = vrcp.f32 %v798_v15  ;;  %v808_v26 = vsel %vm454_vm3, %v803_v23, 0 }
 0x376   : > { %v1210_v20 = vpop.eup %1209 }
 0x377   : > { %v565_v17 = vpop.permute.xlu0 %564  ;;  %v681_v22 = vmul.f32 %v1210_v20, %v1202_v63 }
 0x378   : > { %v570_v18 = vsel %vm454_vm3, %v565_v17, 0 }
 0x379   : > { %1118 = vmatpush3.bf16.msra.mxu1 %v570_v18  ;;  %v682_v24 = vpack.c.bf16 %v681_v22, %v681_v22 }
 0x37a   : > { %1129 = vmatprep.subr.bf16.mxu1 %v1239_v1 }
 0x37c   : > { %1120 = vmatmul.mubr.msk.bf16.vlgmr.msra.gmra.mrb[8].mxu1 %vm389_vm2, %v563_v7 }
 0x37d   : > { %1130 = vmatpush3.bf16.msra.mxu1 %v689_v21  ;;  %1131 = vmatprep.mubr.msk.bf16.mxu1 %vm1240_vm0, %v1239_v1 }
 0x37e   : > { %1141 = vmatprep.subr.bf16.mxu1 %v1239_v1  ;;  %v1212_v25 = vpop.eup %1211 }
 0x37f   : > { %v800_v27 = vmul.f32 %v1212_v25, %v1204_v2 }
 0x381   : > { %v801_v28 = vpack.c.bf16 %v800_v27, %v800_v27 }
 0x384   : > { %1132 = vmatmul.mubr.msk.bf16.vlgmr.msra.gmra.mrb[12].mxu1 %vm389_vm2, %v682_v24 }
 0x385   : > { %1142 = vmatpush3.bf16.msra.mxu1 %v808_v26  ;;  %1143 = vmatprep.mubr.msk.bf16.mxu1 %vm1240_vm0, %v1239_v1 }
 0x38c   : > { %1144 = vmatmul.mubr.msk.bf16.vlgmr.msra.gmra.mrb[16].mxu1 %vm389_vm2, %v801_v28 }
 0x3d4   : > { %v492_v29 = vpop.f32.mrb[4].mxu1 }
 0x3d5   : > { %v498_v30 = vpack.c.bf16 %v492_v29, %v492_v29  ;;  %v1109_v31 = vpop.f32.mrb[5].mxu1 }
 0x3d6   : > { %v495_v32 = vpop.f32.mrb[6].mxu1 }
 0x3d7   : > { %500 = vst.msk [vmem:[#allocation2] sm:$0xf] %vm499_vm4, %v498_v30  ;;  %v1110_v33 = vpop.f32.mrb[7].mxu1 }
 0x44f   : > { %v606_v34 = vpop.f32.mrb[8].mxu1 }
 0x450   : > { %v1055_v35 = vpack.c.bf16 %v606_v34, %v606_v34  ;;  %v1121_v36 = vpop.f32.mrb[9].mxu1 }
 0x451   : > { %v609_v37 = vpop.f32.mrb[10].mxu1 }
 0x452   : > { %616 = vrot.lane.b32.xlu0 %v1055_v35, %s1248_s20  ;;  %v1122_v38 = vpop.f32.mrb[11].mxu1 }
 0x457   : > { %v725_v40 = vpop.f32.mrb[12].mxu1 }
 0x458   : > { %v1056_v42 = vpack.c.bf16 %v725_v40, %v725_v40  ;;  %v1133_v43 = vpop.f32.mrb[13].mxu1 }
 0x459   : > { %v728_v44 = vpop.f32.mrb[14].mxu1 }
 0x45a   : > { %735 = vrot.lane.b32.xlu1 %v1056_v42, %s1249_s29  ;;  %v1134_v45 = vpop.f32.mrb[15].mxu1 }
 0x45f   : > { %v844_v46 = vpop.f32.mrb[16].mxu1 }
 0x460   : > { %v1057_v47 = vpack.c.bf16 %v844_v46, %v844_v46  ;;  %v1145_v48 = vpop.f32.mrb[17].mxu1 }
 0x461   : > { %v847_v49 = vpop.f32.mrb[18].mxu1 }
 0x462   : > { %854 = vrot.lane.b32.xlu0 %v1057_v47, %s1250_s30  ;;  %v1146_v50 = vpop.f32.mrb[19].mxu1 }
 0x4c4   : > { %v617_v51 = vpop.permute.xlu0 %616 }
 0x4c5   : > { %620 = vst.msk [vmem:[#allocation2] sm:$0xf] %vm619_vm5, %v617_v51 }
 0x4cc   : > { %v736_v52 = vpop.permute.xlu1 %735 }
 0x4cd   : > { %739 = vst.msk [vmem:[#allocation2] sm:$0xf] %vm738_vm6, %v736_v52 }
 0x4d4   : > { %v855_v1 = vpop.permute.xlu0 %854 }
 0x4d5   : > { %858 = vst.msk [vmem:[#allocation2] sm:$0xf] %vm857_vm7, %v855_v1 }
 0x4dc   : > { %v859_v53 = vld [vmem:[#allocation2] sm:$0xf] }
 0x4dd   : > { %1152 = vmatmul.mubr.msk.bf16.vlgmr.msra.gmra.mrb[20].mxu0 %vm286_vm1, %v859_v53 }
 0x5b0   : > { %v913_v55 = vpop.f32.mrb[20].mxu0 }
 0x5b1   : > { %v919_v56 = vadd.f32 %v913_v55, %v269_v54  ;;  %v1153_v57 = vpop.f32.mrb[21].mxu0 }
 0x5b2   : > { %v916_v58 = vpop.f32.mrb[22].mxu0 }
 0x5b3   : > { %v1154_v59 = vpop.f32.mrb[23].mxu0  ;;  %v920_v60 = vsel %vm286_vm1, %v919_v56, 0.0 }
 0x5b4   : > { %921 = vadd.xlane.f32.xlu1 %v920_v60 }
 0x641   : > { %v922_v61 = vpop.xlane.xlu1 %921 }
 0x642   : > { %v924_v62 = vmul.f32 0.03125, %v922_v61 }
 0x644   : > { %v925_v63 = vsub.f32 %v919_v56, %v924_v62 }
 0x646   : > { %v926_v0 = vmul.f32 %v925_v63, %v925_v63 }
 0x648   : > { %v927_v2 = vsel %vm286_vm1, %v926_v0, 0.0 }
 0x649   : > { %928 = vadd.xlane.f32.xlu0 %v927_v2 }
 0x6d6   : > { %v929_v3 = vpop.xlane.xlu0 %928 }
 0x6d7   : > { %v930_v4 = vmul.f32 0.03125, %v929_v3 }
 0x6d9   : > { %v931_v6 = vadd.f32 1e-05, %v930_v4 }
 0x6db   : > { %1213 = vrsqrt.f32 %v931_v6 }
 0x6e5   : > { %v1214_v5 = vpop.eup %1213 }
 0x6e6   : > { %v933_v9 = vmul.f32 %v1214_v5, %v925_v63 }
 0x6e8   : > { %v941_v11 = vmul.f32 %v1051_v8, %v933_v9 }
 0x6ea   : > { %v949_v12 = vadd.f32 %v1052_v10, %v941_v11 }
 0x6ec   : > { %v950_v13 = vpack.c.bf16 %v949_v12, %v949_v12 }
 0x6ee   : > { %952 = vst.msk [vmem:[%s266_s14] sm:$0xf] %vm951_vm8, %v950_v13 }
 0x6ef PF: > { %s16_s23 = sadd.s32 1, %s1237_s23   ;;  %s1437_s21 = smov %s1233_s22 }
 0x6f0   : > { %p13_p5 = scmp.ge.s32.totalorder %s16_s23, 4   ;;  %s1438_s22 = smov %s1440_s24 }
 0x6f2   :  { %15 = sbr.rel (!%p13_p5) target bundleno = 2 (0x2), region = 74 }

</bundles_post_ra>
